<compile_context>
chip_gen: v6e
topology: v6e:2x2x1
jax: 0.10.0
libtpu: 0.0.40
codegen_flags: <defaults>
</compile_context>

<pallas_src>
import functools

import jax
import jax.numpy as jnp
from jax.experimental import pallas as pl
from jax.experimental.pallas import tpu as pltpu

BN_EPS = 1e-5


# ---------------------------------------------------------------------------
# VMEM budget & tile selection helpers.
# ---------------------------------------------------------------------------
def _vmem_capacity_bytes():
    try:
        info = pltpu.get_tpu_info()
        cap = int(getattr(info, "vmem_capacity_bytes", 0))
        if cap > 0:
            return cap
    except Exception:
        pass
    return 64 * 1024 * 1024   # conservative fallback (v7x per-TC VMEM)


def _tile_candidates(n, multiple, cap):
    """Descending list of tile sizes d <= cap with d % multiple == 0 and n % d == 0."""
    cap = max(min(cap, n), multiple)
    start = cap - (cap % multiple)
    return [d for d in range(start, 0, -multiple) if n % d == 0]


def _select_adj_tiles(np_, fp, adj_bytes, residual, budget, tm_cap, tk_cap):
    """Largest (tm, tk) for the A_hat @ hw matmul that fits the VMEM budget."""
    tms = _tile_candidates(np_, 8, tm_cap)
    tks = _tile_candidates(np_, 128, tk_cap)
    best = None
    for tm in tms:
        for tk in tks:
            need = (2 * tm * tk * adj_bytes            # A_hat tile (double-buffered)
                    + 2 * tk * fp * adj_bytes          # hw tile
                    + 2 * tm * fp * 4                  # f32 resident output/accumulator
                    + (2 * tm * fp * 4 if residual else 0)  # residual x tile ('res+')
                    + 2 * fp * 4)                      # bias
            if need > budget:
                continue
            key = (tm * tk, tm)
            if best is None or key > best[0]:
                best = (key, tm, tk)
    if best is None:
        return tms[-1], tks[-1]
    return best[1], best[2]


def _select_stream_tile(np_, fp, budget, cap):
    """Row tile for the pure-streaming elementwise kernels (independent of matmul tm)."""
    cands = _tile_candidates(np_, 8, cap)
    fixed = 2 * fp * fp * 4 + 8 * fp * 4               # resident W + small vectors
    for tm in cands:
        if fixed + 6 * tm * fp * 4 <= budget:          # 3 double-buffered f32 streams
            return tm
    return cands[-1]


# ---------------------------------------------------------------------------
# 1. Column statistics: mean and 1/sqrt(var + eps) over the real rows.
#    Shifted-variance accumulation (shift = column mean of tile 0) avoids the
#    E[x^2]-E[x]^2 cancellation; padded rows are masked out.
# ---------------------------------------------------------------------------
def _col_stats_kernel(x_ref, mean_ref, inv_ref, shift_ref, *, n_rows, tile_rows):
    i = pl.program_id(0)
    x = x_ref[...].astype(jnp.float32)
    row = jax.lax.broadcasted_iota(jnp.int32, x.shape, 0) + i * tile_rows
    valid = row < n_rows
    xm = jnp.where(valid, x, 0.0)

    @pl.when(i == 0)
    def _():
        cnt0 = float(min(tile_rows, n_rows))
        shift_ref[...] = jnp.sum(xm, axis=0, keepdims=True) * (1.0 / cnt0)
        mean_ref[...] = jnp.zeros_like(mean_ref)
        inv_ref[...] = jnp.zeros_like(inv_ref)

    s = shift_ref[...]
    mean_ref[...] += jnp.sum(xm, axis=0, keepdims=True)                 # running sum
    inv_ref[...] += jnp.sum(jnp.where(valid, (x - s) * (x - s), 0.0),
                            axis=0, keepdims=True)                      # shifted sq-sum

    @pl.when(i == pl.num_programs(0) - 1)
    def _():
        inv_n = 1.0 / float(n_rows)
        m = mean_ref[...] * inv_n
        var = jnp.maximum(inv_ref[...] * inv_n - (m - s) * (m - s), 0.0)
        mean_ref[...] = m
        inv_ref[...] = jax.lax.rsqrt(var + BN_EPS)


def _col_stats(xp, n_rows, tm, vmem_limit):
    n, fp = xp.shape
    return pl.pallas_call(
        functools.partial(_col_stats_kernel, n_rows=n_rows, tile_rows=tm),
        out_shape=(jax.ShapeDtypeStruct((1, fp), jnp.float32),
                   jax.ShapeDtypeStruct((1, fp), jnp.float32)),
        grid=(n // tm,),
        in_specs=[pl.BlockSpec((tm, fp), lambda i: (i, 0))],
        out_specs=(pl.BlockSpec((1, fp), lambda i: (0, 0)),
                   pl.BlockSpec((1, fp), lambda i: (0, 0))),
        scratch_shapes=[pltpu.VMEM((1, fp), jnp.float32)],
        compiler_params=pltpu.CompilerParams(
            dimension_semantics=("arbitrary",), vmem_limit_bytes=vmem_limit),
    )(xp)


# ---------------------------------------------------------------------------
# 2. Feature transform prologue:  (optional BN + ReLU) -> h @ W   (per row tile).
#    Both MXU operands fed in the MXU dtype; f32 accumulation.
# ---------------------------------------------------------------------------
def _bn_relu_xw_kernel(x_ref, mean_ref, inv_ref, gamma_ref, beta_ref, w_ref, hw_ref):
    x = x_ref[...].astype(jnp.float32)
    h = (x - mean_ref[...]) * inv_ref[...] * gamma_ref[...] + beta_ref[...]
    h = jnp.maximum(h, 0.0)
    # TODO(synk): dropout with p>0 (training) needs pltpu.prng_* here; p=0.0 is identity.
    hw_ref[...] = jnp.dot(h.astype(w_ref.dtype), w_ref[...],
                          preferred_element_type=jnp.float32).astype(hw_ref.dtype)


def _xw_kernel(x_ref, w_ref, hw_ref):
    hw_ref[...] = jnp.dot(x_ref[...].astype(w_ref.dtype), w_ref[...],
                          preferred_element_type=jnp.float32).astype(hw_ref.dtype)


def _bn_relu_xw(xp, mean, inv, gammap, betap, wp, tm, out_dtype, vmem_limit):
    n, fp = xp.shape
    vec = pl.BlockSpec((1, fp), lambda i: (0, 0))
    row = pl.BlockSpec((tm, fp), lambda i: (i, 0))
    return pl.pallas_call(
        _bn_relu_xw_kernel,
        out_shape=jax.ShapeDtypeStruct((n, fp), out_dtype),
        grid=(n // tm,),
        in_specs=[row, vec, vec, vec, vec, pl.BlockSpec((fp, fp), lambda i: (0, 0))],
        out_specs=row,
        compiler_params=pltpu.CompilerParams(
            dimension_semantics=("parallel",), vmem_limit_bytes=vmem_limit),
    )(xp, mean, inv, gammap, betap, wp)


def _xw(xp, wp, tm, out_dtype, vmem_limit):
    n, fp = xp.shape
    row = pl.BlockSpec((tm, fp), lambda i: (i, 0))
    return pl.pallas_call(
        _xw_kernel,
        out_shape=jax.ShapeDtypeStruct((n, fp), out_dtype),
        grid=(n // tm,),
        in_specs=[row, pl.BlockSpec((fp, fp), lambda i: (0, 0))],
        out_specs=row,
        compiler_params=pltpu.CompilerParams(
            dimension_semantics=("parallel",), vmem_limit_bytes=vmem_limit),
    )(xp, wp)


# ---------------------------------------------------------------------------
# 3. Tiled A_hat @ hw  (+ bias, + optional residual) — the dominant matmul.
#    The f32 output block is the accumulator (resident across the reduction axis);
#    no VMEM scratch.  'res' variant carries no dead residual stream.
# ---------------------------------------------------------------------------
def _adj_matmul_res_kernel(adj_ref, hw_ref, x_ref, bias_ref, out_ref):
    @pl.when(pl.program_id(1) == 0)
    def _():
        out_ref[...] = bias_ref[...] + x_ref[...].astype(jnp.float32)

    out_ref[...] += jnp.dot(adj_ref[...], hw_ref[...],
                            preferred_element_type=jnp.float32)


def _adj_matmul_kernel(adj_ref, hw_ref, bias_ref, out_ref):
    @pl.when(pl.program_id(1) == 0)
    def _():
        out_ref[...] = jnp.zeros_like(out_ref) + bias_ref[...]

    out_ref[...] += jnp.dot(adj_ref[...], hw_ref[...],
                            preferred_element_type=jnp.float32)


def _adj_matmul(adj_m, hw, xp, biasp, tm, tk, add_residual, vmem_limit):
    n = adj_m.shape[0]
    fp = hw.shape[1]
    adj_spec = pl.BlockSpec((tm, tk), lambda i, k: (i, k))
    hw_spec = pl.BlockSpec((tk, fp), lambda i, k: (k, 0))
    bias_spec = pl.BlockSpec((1, fp), lambda i, k: (0, 0))
    out_spec = pl.BlockSpec((tm, fp), lambda i, k: (i, 0))
    if add_residual:
        kernel = _adj_matmul_res_kernel
        in_specs = [adj_spec, hw_spec, pl.BlockSpec((tm, fp), lambda i, k: (i, 0)),
                    bias_spec]
        args = (adj_m, hw, xp, biasp)
    else:
        kernel = _adj_matmul_kernel
        in_specs = [adj_spec, hw_spec, bias_spec]
        args = (adj_m, hw, biasp)
    return pl.pallas_call(
        kernel,
        out_shape=jax.ShapeDtypeStruct((n, fp), jnp.float32),
        grid=(n // tm, n // tk),
        in_specs=in_specs,
        out_specs=out_spec,
        compiler_params=pltpu.CompilerParams(
            dimension_semantics=("parallel", "arbitrary"),
            vmem_limit_bytes=vmem_limit),
    )(*args)


# ---------------------------------------------------------------------------
# 4. Elementwise epilogue for 'res':  out = x + relu(BN(t)).
# ---------------------------------------------------------------------------
def _bn_relu_res_kernel(t_ref, x_ref, mean_ref, inv_ref, gamma_ref, beta_ref, out_ref):
    t = t_ref[...].astype(jnp.float32)
    h = (t - mean_ref[...]) * inv_ref[...] * gamma_ref[...] + beta_ref[...]
    h = jnp.maximum(h, 0.0)
    out_ref[...] = (x_ref[...].astype(jnp.float32) + h).astype(out_ref.dtype)


def _bn_relu_res(t, xp, mean, inv, gammap, betap, tm, vmem_limit):
    n, fp = t.shape
    vec = pl.BlockSpec((1, fp), lambda i: (0, 0))
    row = pl.BlockSpec((tm, fp), lambda i: (i, 0))
    return pl.pallas_call(
        _bn_relu_res_kernel,
        out_shape=jax.ShapeDtypeStruct((n, fp), jnp.float32),
        grid=(n // tm,),
        in_specs=[row, row, vec, vec, vec, vec],
        out_specs=row,
        compiler_params=pltpu.CompilerParams(
            dimension_semantics=("parallel",), vmem_limit_bytes=vmem_limit),
    )(t, xp, mean, inv, gammap, betap)


# ---------------------------------------------------------------------------
# Top-level layer.
# ---------------------------------------------------------------------------
def deepgcn_layer(x, adj, w, bias, gamma, beta, connection="res+",
                  dropout=0.0, mxu_dtype=jnp.bfloat16,
                  max_row_tile=None, max_red_tile=None):
    """x: [N, F] f32; adj: [N, N] normalized adjacency; w: [F, F]; bias/gamma/beta: [1, F]."""
    if dropout != 0.0:
        raise NotImplementedError("dropout > 0 needs an in-kernel PRNG path")
    n, f = x.shape
    assert adj.shape == (n, n) and w.shape == (f, f)

    # Generation-aware VMEM budget (v7x 64 MiB vs v5e/v6e 128 MiB physical).
    cap = _vmem_capacity_bytes()
    vmem_limit = int(max(32 * 1024 * 1024, min(cap * 3 // 4, 100 * 1024 * 1024)))
    tile_budget = int(vmem_limit * 0.8)

    # Lane-pad features and row-pad nodes to multiples of 128 (lane-dense stores,
    # never a full-extent (N, N) adjacency block for awkward N).
    fp = ((f + 127) // 128) * 128
    np_ = ((n + 127) // 128) * 128

    def pad2(a, rpad, cpad):
        return a if (rpad == 0 and cpad == 0) else jnp.pad(a, ((0, rpad), (0, cpad)))

    xp = pad2(x.astype(jnp.float32), np_ - n, fp - f)
    adj_m = pad2(adj.astype(jnp.float32), np_ - n, np_ - n).astype(mxu_dtype)
    wp = pad2(w.astype(jnp.float32), fp - f, fp - f).astype(mxu_dtype)
    biasp = pad2(bias.astype(jnp.float32), 0, fp - f)
    gammap = pad2(gamma.astype(jnp.float32), 0, fp - f)
    betap = pad2(beta.astype(jnp.float32), 0, fp - f)

    tm_cap = max_row_tile if max_row_tile is not None else 2048
    tk_cap = max_red_tile if max_red_tile is not None else 4096
    adj_bytes = jnp.dtype(mxu_dtype).itemsize

    # Dominant matmul tiles derived from VMEM arithmetic (biggest that fits).
    tm, tk = _select_adj_tiles(np_, fp, adj_bytes, residual=(connection == "res+"),
                               budget=tile_budget, tm_cap=tm_cap, tk_cap=tk_cap)
    # Streaming kernels get their own (large) row tile, decoupled from the matmul.
    tm_s = _select_stream_tile(np_, fp, tile_budget, tm_cap)

    if connection == "res+":
        mean, inv = _col_stats(xp, n, tm_s, vmem_limit)
        hw = _bn_relu_xw(xp, mean, inv, gammap, betap, wp, tm_s, mxu_dtype, vmem_limit)
        out = _adj_matmul(adj_m, hw, xp, biasp, tm, tk, True, vmem_limit)
    elif connection == "res":
        hw = _xw(xp, wp, tm_s, mxu_dtype, vmem_limit)
        t = _adj_matmul(adj_m, hw, xp, biasp, tm, tk, False, vmem_limit)
        mean, inv = _col_stats(t, n, tm_s, vmem_limit)
        out = _bn_relu_res(t, xp, mean, inv, gammap, betap, tm_s, vmem_limit)
    else:
        raise NotImplementedError(connection)

    return out[:n, :f]


# ---------------------------------------------------------------------------
# Pure-JAX reference (PyTorch forward semantics, training-mode BN, dropout p=0).
# ---------------------------------------------------------------------------
def _reference(x, adj, w, bias, gamma, beta, connection):
    def bn_relu(h):
        mean = jnp.mean(h, axis=0, keepdims=True)
        var = jnp.mean((h - mean) ** 2, axis=0, keepdims=True)
        return jnp.maximum((h - mean) / jnp.sqrt(var + BN_EPS) * gamma + beta, 0.0)

    def conv(h):
        return adj @ (h @ w) + bias

    if connection == "res+":
        return x + conv(bn_relu(x))
    return x + bn_relu(conv(x))


if __name__ == "__main__":
    F = 32
    key = jax.random.PRNGKey(0)

    # N=1024 (divisible) and N=777 (exercises row padding + masked statistics).
    for N in (1024, 777):
        kx, ka, kw = jax.random.split(jax.random.fold_in(key, N), 3)
        kb, kg, kbe = jax.random.split(jax.random.fold_in(key, N + 1), 3)

        x = jax.random.normal(kx, (N, F), dtype=jnp.float32)

        # Deterministic synthetic graph: sparse symmetric adjacency + self-loops,
        # symmetrically degree-normalized (standard GCN propagation matrix).
        a = (jax.random.uniform(ka, (N, N)) < 0.05).astype(jnp.float32)
        a = jnp.maximum(a, a.T) + jnp.eye(N, dtype=jnp.float32)
        deg = jnp.sum(a, axis=1)
        d_inv_sqrt = 1.0 / jnp.sqrt(deg)
        adj = a * d_inv_sqrt[:, None] * d_inv_sqrt[None, :]

        w = jax.random.normal(kw, (F, F), dtype=jnp.float32) * (1.0 / jnp.sqrt(F))
        bias = 0.1 * jax.random.normal(kb, (1, F), dtype=jnp.float32)
        gamma = 1.0 + 0.1 * jax.random.normal(kg, (1, F), dtype=jnp.float32)
        beta = 0.1 * jax.random.normal(kbe, (1, F), dtype=jnp.float32)

        for connection in ("res+", "res"):
            ref = _reference(x, adj, w, bias, gamma, beta, connection)

            # Exact f32 path with small forced tiles: exercises the multi-step reduction
            # grid, the resident-output accumulator, row masking, and multi-tile
            # shifted-variance stats.
            out_f32 = jax.block_until_ready(deepgcn_layer(
                x, adj, w, bias, gamma, beta, connection=connection,
                mxu_dtype=jnp.float32, max_row_tile=256, max_red_tile=256))
            assert out_f32.shape == (N, F) and out_f32.dtype == jnp.float32
            assert jnp.allclose(out_f32, ref, atol=2e-4, rtol=2e-4), \
                f"f32 mismatch: {connection}, N={N}"

            # Default perf path: bf16 A_hat / hw / W MXU feeds, f32 accumulation,
            # VMEM-budget-derived (large) tiles.
            out_bf = jax.block_until_ready(deepgcn_layer(
                x, adj, w, bias, gamma, beta, connection=connection))
            assert out_bf.shape == (N, F)
            rel_err = float(jnp.max(jnp.abs(out_bf - ref)) /
                            (jnp.max(jnp.abs(ref)) + 1e-6))
            assert rel_err < 3e-2, f"bf16 mismatch: {connection}, N={N}, err={rel_err}"

    print("KERNEL_OK")
</pallas_src>

<mosaic_0001>
module attributes {stable_mosaic.version = 11 : i64} {
  func.func @_col_stats_kernel(%arg0: i32, %arg1: memref<256x128xf32, #tpu.memory_space<vmem>>, %arg2: memref<1x128xf32, #tpu.memory_space<vmem>>, %arg3: memref<1x128xf32, #tpu.memory_space<vmem>>, %arg4: memref<1x128xf32, #tpu.memory_space<vmem>>) attributes {dimension_semantics = [#tpu.dimension_semantics<arbitrary>], iteration_bounds = array<i64: 4>, scalar_prefetch = 0 : i64, scratch_operands = 1 : i64, tpu.core_type = #tpu.core_type<tc>, window_params = [{transform_indices = @transform_0, window_bounds = array<i64: 256, 128>}, {pipeline_mode = #tpu.pipeline_mode<synchronous>, transform_indices = @transform_1, window_bounds = array<i64: 1, 128>}, {pipeline_mode = #tpu.pipeline_mode<synchronous>, transform_indices = @transform_2, window_bounds = array<i64: 1, 128>}]} {
    %c0 = arith.constant 0 : index
    %c0_0 = arith.constant 0 : index
    %0 = vector.load %arg1[%c0, %c0_0] : memref<256x128xf32, #tpu.memory_space<vmem>>, vector<256x128xf32>
    %1 = tpu.iota {dimensions = array<i32: 0>} : vector<256x128xi32>
    %c256_i32 = arith.constant 256 : i32
    %2 = arith.muli %arg0, %c256_i32 : i32
    %3 = vector.broadcast %2 : i32 to vector<256x128xi32>
    %4 = arith.addi %1, %3 : vector<256x128xi32>
    %c1024_i32 = arith.constant 1024 : i32
    %5 = vector.broadcast %c1024_i32 : i32 to vector<256x128xi32>
    %6 = arith.cmpi slt, %4, %5 : vector<256x128xi32>
    %cst = arith.constant 0.000000e+00 : f32
    %7 = vector.broadcast %cst : f32 to vector<256x128xf32>
    %8 = arith.select %6, %0, %7 : vector<256x128xi1>, vector<256x128xf32>
    %c0_i32 = arith.constant 0 : i32
    %9 = arith.cmpi eq, %arg0, %c0_i32 : i32
    %10 = arith.extui %9 : i1 to i32
    %c0_i32_1 = arith.constant 0 : i32
    %11 = arith.cmpi ne, %10, %c0_i32_1 : i32
    scf.if %11 {
      %cst_16 = arith.constant dense<0.000000e+00> : vector<128xf32>
      %33 = vector.multi_reduction <add>, %8, %cst_16 [0] : vector<256x128xf32> to vector<128xf32>
      %34 = vector.shape_cast %33 : vector<128xf32> to vector<1x128xf32>
      %cst_17 = arith.constant 3.906250e-03 : f32
      %35 = vector.broadcast %cst_17 : f32 to vector<1x128xf32>
      %36 = arith.mulf %34, %35 : vector<1x128xf32>
      %c0_18 = arith.constant 0 : index
      %c0_19 = arith.constant 0 : index
      %37 = vector.load %arg4[%c0_18, %c0_19] : memref<1x128xf32, #tpu.memory_space<vmem>>, vector<1x128xf32>
      tpu.vector_store %arg4[%c0_18, %c0_19], %36 {strides = array<i32>} : memref<1x128xf32, #tpu.memory_space<vmem>>, vector<1x128xf32>,
      %cst_20 = arith.constant 0.000000e+00 : f32
      %38 = vector.broadcast %cst_20 : f32 to vector<1x128xf32>
      %c0_21 = arith.constant 0 : index
      %c0_22 = arith.constant 0 : index
      %39 = vector.load %arg2[%c0_21, %c0_22] : memref<1x128xf32, #tpu.memory_space<vmem>>, vector<1x128xf32>
      tpu.vector_store %arg2[%c0_21, %c0_22], %38 {strides = array<i32>} : memref<1x128xf32, #tpu.memory_space<vmem>>, vector<1x128xf32>,
      %cst_23 = arith.constant 0.000000e+00 : f32
      %40 = vector.broadcast %cst_23 : f32 to vector<1x128xf32>
      %c0_24 = arith.constant 0 : index
      %c0_25 = arith.constant 0 : index
      %41 = vector.load %arg3[%c0_24, %c0_25] : memref<1x128xf32, #tpu.memory_space<vmem>>, vector<1x128xf32>
      tpu.vector_store %arg3[%c0_24, %c0_25], %40 {strides = array<i32>} : memref<1x128xf32, #tpu.memory_space<vmem>>, vector<1x128xf32>,
    } else {
    }
    %c0_2 = arith.constant 0 : index
    %c0_3 = arith.constant 0 : index
    %12 = vector.load %arg4[%c0_2, %c0_3] : memref<1x128xf32, #tpu.memory_space<vmem>>, vector<1x128xf32>
    %c0_4 = arith.constant 0 : index
    %c0_5 = arith.constant 0 : index
    %13 = vector.load %arg2[%c0_4, %c0_5] : memref<1x128xf32, #tpu.memory_space<vmem>>, vector<1x128xf32>
    %cst_6 = arith.constant dense<0.000000e+00> : vector<128xf32>
    %14 = vector.multi_reduction <add>, %8, %cst_6 [0] : vector<256x128xf32> to vector<128xf32>
    %15 = vector.shape_cast %14 : vector<128xf32> to vector<1x128xf32>
    %16 = arith.addf %13, %15 : vector<1x128xf32>
    %c0_7 = arith.constant 0 : index
    %c0_8 = arith.constant 0 : index
    %17 = vector.load %arg2[%c0_7, %c0_8] : memref<1x128xf32, #tpu.memory_space<vmem>>, vector<1x128xf32>
    tpu.vector_store %arg2[%c0_7, %c0_8], %16 {strides = array<i32>} : memref<1x128xf32, #tpu.memory_space<vmem>>, vector<1x128xf32>,
    %c0_9 = arith.constant 0 : index
    %c0_10 = arith.constant 0 : index
    %18 = vector.load %arg3[%c0_9, %c0_10] : memref<1x128xf32, #tpu.memory_space<vmem>>, vector<1x128xf32>
    %19 = vector.broadcast %12 : vector<1x128xf32> to vector<256x128xf32>
    %20 = arith.subf %0, %19 : vector<256x128xf32>
    %21 = vector.broadcast %12 : vector<1x128xf32> to vector<256x128xf32>
    %22 = arith.subf %0, %21 : vector<256x128xf32>
    %23 = arith.mulf %20, %22 : vector<256x128xf32>
    %cst_11 = arith.constant 0.000000e+00 : f32
    %24 = vector.broadcast %cst_11 : f32 to vector<256x128xf32>
    %25 = arith.select %6, %23, %24 : vector<256x128xi1>, vector<256x128xf32>
    %cst_12 = arith.constant dense<0.000000e+00> : vector<128xf32>
    %26 = vector.multi_reduction <add>, %25, %cst_12 [0] : vector<256x128xf32> to vector<128xf32>
    %27 = vector.shape_cast %26 : vector<128xf32> to vector<1x128xf32>
    %28 = arith.addf %18, %27 : vector<1x128xf32>
    %c0_13 = arith.constant 0 : index
    %c0_14 = arith.constant 0 : index
    %29 = vector.load %arg3[%c0_13, %c0_14] : memref<1x128xf32, #tpu.memory_space<vmem>>, vector<1x128xf32>
    tpu.vector_store %arg3[%c0_13, %c0_14], %28 {strides = array<i32>} : memref<1x128xf32, #tpu.memory_space<vmem>>, vector<1x128xf32>,
    %c3_i32 = arith.constant 3 : i32
    %30 = arith.cmpi eq, %arg0, %c3_i32 : i32
    %31 = arith.extui %30 : i1 to i32
    %c0_i32_15 = arith.constant 0 : i32
    %32 = arith.cmpi ne, %31, %c0_i32_15 : i32
    scf.if %32 {
      %c0_16 = arith.constant 0 : index
      %c0_17 = arith.constant 0 : index
      %33 = vector.load %arg2[%c0_16, %c0_17] : memref<1x128xf32, #tpu.memory_space<vmem>>, vector<1x128xf32>
      %cst_18 = arith.constant 9.765625E-4 : f32
      %34 = vector.broadcast %cst_18 : f32 to vector<1x128xf32>
      %35 = arith.mulf %33, %34 : vector<1x128xf32>
      %c0_19 = arith.constant 0 : index
      %c0_20 = arith.constant 0 : index
      %36 = vector.load %arg3[%c0_19, %c0_20] : memref<1x128xf32, #tpu.memory_space<vmem>>, vector<1x128xf32>
      %cst_21 = arith.constant 9.765625E-4 : f32
      %37 = vector.broadcast %cst_21 : f32 to vector<1x128xf32>
      %38 = arith.mulf %36, %37 : vector<1x128xf32>
      %39 = arith.subf %35, %12 : vector<1x128xf32>
      %40 = arith.subf %35, %12 : vector<1x128xf32>
      %41 = arith.mulf %39, %40 : vector<1x128xf32>
      %42 = arith.subf %38, %41 : vector<1x128xf32>
      %cst_22 = arith.constant 0.000000e+00 : f32
      %43 = vector.broadcast %cst_22 : f32 to vector<1x128xf32>
      %44 = arith.maximumf %42, %43 : vector<1x128xf32>
      %c0_23 = arith.constant 0 : index
      %c0_24 = arith.constant 0 : index
      %45 = vector.load %arg2[%c0_23, %c0_24] : memref<1x128xf32, #tpu.memory_space<vmem>>, vector<1x128xf32>
      tpu.vector_store %arg2[%c0_23, %c0_24], %35 {strides = array<i32>} : memref<1x128xf32, #tpu.memory_space<vmem>>, vector<1x128xf32>,
      %cst_25 = arith.constant 9.99999974E-6 : f32
      %46 = vector.broadcast %cst_25 : f32 to vector<1x128xf32>
      %47 = arith.addf %44, %46 : vector<1x128xf32>
      %48 = math.rsqrt %47 : vector<1x128xf32>
      %c0_26 = arith.constant 0 : index
      %c0_27 = arith.constant 0 : index
      %49 = vector.load %arg3[%c0_26, %c0_27] : memref<1x128xf32, #tpu.memory_space<vmem>>, vector<1x128xf32>
      tpu.vector_store %arg3[%c0_26, %c0_27], %48 {strides = array<i32>} : memref<1x128xf32, #tpu.memory_space<vmem>>, vector<1x128xf32>,
    } else {
    }
    return
  }
  func.func @transform_0(%arg0: i32) -> (i32, i32) {
    %c0_i32 = arith.constant 0 : i32
    %c0_i32_0 = arith.constant 0 : i32
    return %arg0, %c0_i32 : i32, i32
  }
  func.func @transform_1(%arg0: i32) -> (i32, i32) {
    %c0_i32 = arith.constant 0 : i32
    %c0_i32_0 = arith.constant 0 : i32
    %c0_i32_1 = arith.constant 0 : i32
    return %c0_i32, %c0_i32_0 : i32, i32
  }
  func.func @transform_2(%arg0: i32) -> (i32, i32) {
    %c0_i32 = arith.constant 0 : i32
    %c0_i32_0 = arith.constant 0 : i32
    %c0_i32_1 = arith.constant 0 : i32
    return %c0_i32, %c0_i32_0 : i32, i32
  }
}

</mosaic_0001>

<bundles_post_ra>
// kernel: tpu_custom_call.1
= control target key start
LH: loop header
LB: loop body
LE: loop exit
PB: predicated region body
PF: predicated region fallthrough
CT: control target
= control target key end

     0   :  { %8 = vsyncpa [#allocation4], 0  ;;  %s1596_s0 = inlined_call_operand.hbm [shape: f32[1024,128], index: 0, kind: input, shape index: {}]   ;;  %s1597_s1 = inlined_call_operand.hbm [shape: f32[1,128], index: 1, kind: output, shape index: {0}]   ;;  %s1598_s2 = inlined_call_operand.hbm [shape: f32[1,128], index: 2, kind: output, shape index: {1}]  }
   0x1   :  { %10 = vsyncpa [#allocation4 + $0x1], 0 }
   0x2   :  { %11 = vsyncpa [#allocation5], 0 }
   0x3   :  { %12 = vsyncpa [#allocation8], 0  ;;  %s853_s9 = smov 0   ;;  %s855_s10 = smov 0  }
   0x4   :  { %s857_s11 = smov 0   ;;  %s859_s12 = smov 0  }
   0x5 LB: > { %s872_s13 = sadd.s32 4294967295, %s830_s12   ;;  %s875_s14 = sadd.s32 1, %s830_s12   ;;  %s830_s12 = sphi %s859_s12, %s1793_s12   ;;  %s826_s11 = sphi %s857_s11, %s1792_s11   ;;  %s822_s10 = sphi %s855_s10, %s1791_s10   ;;  %s818_s9 = sphi %s853_s9, %s1790_s9  }
   0x6   : > { %s22_s15 = ssub.s32 %s830_s12, %s875_s14  ;;  %s25_s16 = sadd.s32 1, %s826_s11 }
   0x7   : > { %p23_p0 = scmp.eq.s32.totalorder %s22_s15, 0  ;;  %p32_p1 = scmp.ne.s32.totalorder %s826_s11, %s822_s10 }
   0x8   : > { %p33_p2 = scmp.eq.s32.totalorder %s830_s12, 0  ;;  %p38_p3 = scmp.ne.s32.totalorder %s822_s10, %s818_s9 }
   0x9   : > { %s885_s17 = scalar_select %p23_p0, %s826_s11, %s25_s16  }
   0xa   : > { %p34_p4 = por %p33_p2, %p32_p1  ;;  %p39_p5 = scmp.eq.s32.totalorder %s872_s13, 0 }
   0xb   : > { %p668_p6 = scmp.lt.s32.totalorder %s830_s12, 4  ;;  %s104_s19 = sand.u32 1, %s826_s11  }
   0xc   : > { %p889_p7 = por %p39_p5, %p38_p3  ;;  %s639_s20 = sshll.u32 %s104_s19, 8 }
   0xd   : > { %s653_s21 = sshll.u32 %s830_s12, 12  ;;  %s108_s25 = scalar_lea.vmem [#allocation3], %s639_s20 }
   0xe   : > { %s1653_s18 = scalar_select %p889_p7, 1, 0 }
   0xf   : > { %s898_s24 = scalar_lea.hbm %s1596_s0, %s653_s21  ;;  %s115_s26 = sshll.u32 %s108_s25, 4  ;;  %s900_s26 = int_to_ptr.vmem [resolvable:$true] %s115_s26 }
  0x10   : > { %p902_p8 = pnand %p668_p6, %p34_p4  ;;  %s907_s28 = scalar_lea.sflag [#allocation4], %s104_s19 }
  0x11   : > { %s712_s29 = scalar_lea.hbm %s898_s24, 4096  ;;  %s717_s4 = scalar_lea.hbm %s1596_s0, 16384 }
  0x12   : > { %p713_p10 = scmp.ne.s32.totalorder %s898_s24, %s712_s29  ;;  %p714_p11 = pneg %p902_p8 }
  0x13   : > { %p718_p0 = scmp.lt.s32.totalorder %s898_s24, %s1596_s0  ;;  %p719_p1 = scmp.lt.s32.totalorder %s717_s4, %s712_s29 }
  0x14   : > { %p715_p12 = pnand %p714_p11, %p713_p10 }
  0x15   : > { %p720_p2 = por %p719_p1, %p718_p0 }
  0x16   : > { %p716_p13 = pneg %p715_p12 }
  0x18   : > { %p721_p3 = pnand %p720_p2, %p716_p13 }
  0x1a   : > { %724 = shalt.err (!%p721_p3)
}
  0x1b   : > { %s725_s7 = scalar_lea.vmem %s900_s26, 4096  ;;  %s832_s8 = smov [#allocation3]  }
  0x1c   : > { %p726_p4 = scmp.ne.s32.totalorder %s900_s26, %s725_s7  ;;  %s730_s9 = sshll.u32 %s832_s8, 4  ;;  %s731_s9 = int_to_ptr.vmem [resolvable:$false] %s730_s9 }
  0x1d   : > { %s732_s15 = scalar_lea.vmem %s731_s9, 8192  ;;  %p733_p10 = scmp.lt.s32.totalorder %s900_s26, %s731_s9 }
  0x1e   : > { %p728_p5 = pnand %p726_p4, %p714_p11  ;;  %p734_p12 = scmp.lt.s32.totalorder %s732_s15, %s725_s7 }
  0x20   : > { %p729_p6 = pneg %p728_p5  ;;  %p735_p9 = por %p734_p12, %p733_p10 }
  0x22   : > { %p736_p7 = pnand %p735_p9, %p729_p6 }
  0x24   : > { %739 = shalt.err (!%p736_p7)
}
  0x25   : > { %s833_s16 = smov 128   ;;  %s834_s19 = smov 8  }
  0x26   : > { %667 = dma.hbm_to_vmem [thread:$0]  (!%p902_p8), %s898_s24, 4096, %s900_s26, %s907_s28, %s833_s16, %s833_s16, %s834_s19  }
  0x27   : > { %p123_p11 = scmp.lt.s32.totalorder %s830_s12, 5  ;;  %p1655_p13 = scmp.ge.s32.totalorder %s830_s12, 1 }
  0x29   : > { %p124_p0 = pnand %p1655_p13, %p123_p11 }
  0x2b   : > { %127 = sbr.rel (%p124_p0) target bundleno = 333 (0x14d), region = 24 }
  0x30   : > { %s129_s20 = sand.u32 1, %s822_s10   ;;  %p1656_p7 = scmp.ne.s32.totalorder %s1653_s18, 0 }
  0x31   : > { %s643_s21 = sshll.u32 %s129_s20, 8  ;;  %s130_s22 = scalar_lea.sflag [#allocation4], %s129_s20 }
  0x32   : > { %s932_s23 = scalar_lea.vmem [#allocation3], %s643_s21 }
  0x33   : > { %805 = dma.done.wait (%p1656_p7), %s130_s22, 4096  }
  0x34   : > { %807 = vsyncadd (%p1656_p7), %s130_s22, 4294963200  ;;  %v182_v0 = vlaneseq  ;;  %s644_s25 = sshll.u32 %s872_s13, 8  ;;  %p645_p8 = scmp.ne.s32.totalorder %s872_s13, 0 }
  0x35   : > { %v941_v2 = vstv %s644_s25 }
  0x36   : > { %v939_v1 = vshrl.u32 %v182_v0, 7 }
  0x38   : > { %v184_v3 = vadd.s32 8, %v939_v1  ;;  %v185_v4 = vadd.s32 16, %v939_v1  ;;  %v186_v5 = vadd.s32 24, %v939_v1  ;;  %v187_v6 = vadd.s32 32, %v939_v1 }
  0x39   : > { %v188_v7 = vadd.s32 40, %v939_v1  ;;  %v189_v8 = vadd.s32 48, %v939_v1  ;;  %v190_v9 = vadd.s32 56, %v939_v1  ;;  %v191_v10 = vadd.s32 64, %v939_v1 }
  0x3a   : > { %v192_v11 = vadd.s32 72, %v939_v1  ;;  %v193_v12 = vadd.s32 80, %v939_v1  ;;  %v194_v13 = vadd.s32 88, %v939_v1  ;;  %v195_v14 = vadd.s32 96, %v939_v1 }
  0x3b   : > { %v196_v15 = vadd.s32 104, %v939_v1  ;;  %v197_v16 = vadd.s32 112, %v939_v1  ;;  %v198_v17 = vadd.s32 120, %v939_v1  ;;  %v960_v18 = vadd.s32 %v941_v2, %v939_v1 }
  0x3c   : > { %v199_v19 = vadd.s32 128, %v939_v1  ;;  %v200_v20 = vadd.s32 136, %v939_v1  ;;  %v201_v21 = vadd.s32 144, %v939_v1  ;;  %v966_v22 = vadd.s32 %v941_v2, %v184_v3 }
  0x3d   : > { %1657 = vst [vmem:[#allocation12_spill] sm:$0xff] %v960_v18  ;;  %v202_v23 = vadd.s32 152, %v939_v1  ;;  %v203_v24 = vadd.s32 160, %v939_v1  ;;  %v204_v25 = vadd.s32 168, %v939_v1  ;;  %v972_v26 = vadd.s32 %v941_v2, %v185_v4  ;;  %v1088_v4 = vld [vmem:[%s932_s23 + $0x8] sm:$0xff] }
  0x3e   : > { %1658 = vst [vmem:[#allocation13_spill] sm:$0xff] %v966_v22  ;;  %v205_v27 = vadd.s32 176, %v939_v1  ;;  %v206_v28 = vadd.s32 184, %v939_v1  ;;  %v207_v29 = vadd.s32 192, %v939_v1  ;;  %v978_v30 = vadd.s32 %v941_v2, %v186_v5  ;;  %v1091_v5 = vld [vmem:[%s932_s23 + $0x10] sm:$0xff] }
  0x3f   : > { %1659 = vst [vmem:[#allocation14_spill] sm:$0xff] %v972_v26  ;;  %v208_v31 = vadd.s32 200, %v939_v1  ;;  %v209_v32 = vadd.s32 208, %v939_v1  ;;  %v210_v33 = vadd.s32 216, %v939_v1  ;;  %v984_v34 = vadd.s32 %v941_v2, %v187_v6  ;;  %v1094_v6 = vld [vmem:[%s932_s23 + $0x18] sm:$0xff] }
  0x40   : > { %1660 = vst [vmem:[#allocation15_spill] sm:$0xff] %v978_v30  ;;  %v211_v35 = vadd.s32 224, %v939_v1  ;;  %v212_v36 = vadd.s32 232, %v939_v1  ;;  %v213_v37 = vadd.s32 240, %v939_v1  ;;  %v990_v38 = vadd.s32 %v941_v2, %v188_v7  ;;  %v1097_v7 = vld [vmem:[%s932_s23 + $0x20] sm:$0xff] }
  0x41   : > { %1661 = vst [vmem:[#allocation16_spill] sm:$0xff] %v984_v34  ;;  %v214_v39 = vadd.s32 248, %v939_v1  ;;  %v994_v40 = vadd.s32 %v941_v2, %v189_v8  ;;  %v997_v41 = vadd.s32 %v941_v2, %v190_v9  ;;  %v1000_v42 = vadd.s32 %v941_v2, %v191_v10  ;;  %v1104_v8 = vld [vmem:[%s932_s23 + $0x28] sm:$0xff]  ;;  %v1107_v9 = vld [vmem:[%s932_s23 + $0x30] sm:$0xff]  ;;  %v1110_v10 = vld [vmem:[%s932_s23 + $0x38] sm:$0xff] }
  0x42   : > { %1662 = vst [vmem:[#allocation17_spill] sm:$0xff] %v990_v38  ;;  %v1003_v43 = vadd.s32 %v941_v2, %v192_v11  ;;  %v1006_v44 = vadd.s32 %v941_v2, %v193_v12  ;;  %v1009_v45 = vadd.s32 %v941_v2, %v194_v13  ;;  %v1012_v46 = vadd.s32 %v941_v2, %v195_v14  ;;  %v1113_v11 = vld [vmem:[%s932_s23 + $0x40] sm:$0xff]  ;;  %v1120_v12 = vld [vmem:[%s932_s23 + $0x48] sm:$0xff]  ;;  %v1123_v13 = vld [vmem:[%s932_s23 + $0x50] sm:$0xff] }
  0x43   : > { %1663 = vst [vmem:[#allocation18_spill] sm:$0xff] %v994_v40  ;;  %1664 = vst [vmem:[#allocation19_spill] sm:$0xff] %v997_v41  ;;  %v1015_v47 = vadd.s32 %v941_v2, %v196_v15  ;;  %v1018_v48 = vadd.s32 %v941_v2, %v197_v16  ;;  %v1021_v49 = vadd.s32 %v941_v2, %v198_v17  ;;  %vm249_vm0 = vcmp.lt.s32.totalorder %v960_v18, 1024  ;;  %v1126_v14 = vld [vmem:[%s932_s23 + $0x58] sm:$0xff]  ;;  %v1129_v15 = vld [vmem:[%s932_s23 + $0x60] sm:$0xff] }
  0x44   : > { %1665 = vst [vmem:[#allocation20_spill] sm:$0xff] %v1000_v42  ;;  %1666 = vst [vmem:[#allocation21_spill] sm:$0xff] %v1003_v43  ;;  %v1024_v50 = vadd.s32 %v941_v2, %v199_v19  ;;  %v1027_v51 = vadd.s32 %v941_v2, %v200_v20  ;;  %v1030_v52 = vadd.s32 %v941_v2, %v201_v21  ;;  %vm250_vm1 = vcmp.lt.s32.totalorder %v966_v22, 1024  ;;  %v1136_v16 = vld [vmem:[%s932_s23 + $0x68] sm:$0xff]  ;;  %v1139_v17 = vld [vmem:[%s932_s23 + $0x70] sm:$0xff] }
  0x45   : > { %1667 = vst [vmem:[#allocation22_spill] sm:$0xff] %v1006_v44  ;;  %1668 = vst [vmem:[#allocation23_spill] sm:$0xff] %v1009_v45  ;;  %v1033_v53 = vadd.s32 %v941_v2, %v202_v23  ;;  %v1036_v54 = vadd.s32 %v941_v2, %v203_v24  ;;  %v1039_v55 = vadd.s32 %v941_v2, %v204_v25  ;;  %vm251_vm2 = vcmp.lt.s32.totalorder %v972_v26, 1024  ;;  %v1142_v19 = vld [vmem:[%s932_s23 + $0x78] sm:$0xff]  ;;  %v1145_v20 = vld [vmem:[%s932_s23 + $0x80] sm:$0xff] }
  0x46   : > { %1669 = vst [vmem:[#allocation24_spill] sm:$0xff] %v1012_v46  ;;  %1670 = vst [vmem:[#allocation25_spill] sm:$0xff] %v1015_v47  ;;  %v1042_v56 = vadd.s32 %v941_v2, %v205_v27  ;;  %v1045_v57 = vadd.s32 %v941_v2, %v206_v28  ;;  %v1048_v58 = vadd.s32 %v941_v2, %v207_v29  ;;  %vm252_vm3 = vcmp.lt.s32.totalorder %v978_v30, 1024  ;;  %v1152_v21 = vld [vmem:[%s932_s23 + $0x88] sm:$0xff]  ;;  %v1155_v23 = vld [vmem:[%s932_s23 + $0x90] sm:$0xff] }
  0x47   : > { %1671 = vst [vmem:[#allocation26_spill] sm:$0xff] %v1018_v48  ;;  %1672 = vst [vmem:[#allocation27_spill] sm:$0xff] %v1021_v49  ;;  %v1051_v59 = vadd.s32 %v941_v2, %v208_v31  ;;  %v1054_v60 = vadd.s32 %v941_v2, %v209_v32  ;;  %v1057_v61 = vadd.s32 %v941_v2, %v210_v33  ;;  %vm253_vm4 = vcmp.lt.s32.totalorder %v984_v34, 1024  ;;  %v1158_v24 = vld [vmem:[%s932_s23 + $0x98] sm:$0xff]  ;;  %v1161_v25 = vld [vmem:[%s932_s23 + $0xa0] sm:$0xff] }
  0x48   : > { %1673 = vst [vmem:[#allocation28_spill] sm:$0xff] %v1024_v50  ;;  %1674 = vst [vmem:[#allocation29_spill] sm:$0xff] %v1027_v51  ;;  %v1060_v62 = vadd.s32 %v941_v2, %v211_v35  ;;  %v1063_v63 = vadd.s32 %v941_v2, %v212_v36  ;;  %v1066_v0 = vadd.s32 %v941_v2, %v213_v37  ;;  %vm254_vm5 = vcmp.lt.s32.totalorder %v990_v38, 1024  ;;  %v1172_v28 = vld [vmem:[%s932_s23 + $0xa8] sm:$0xff]  ;;  %v1175_v29 = vld [vmem:[%s932_s23 + $0xb0] sm:$0xff] }
  0x49   : > { %1675 = vst [vmem:[#allocation30_spill] sm:$0xff] %v1030_v52  ;;  %1676 = vst [vmem:[#allocation31_spill] sm:$0xff] %v1033_v53  ;;  %v1069_v3 = vadd.s32 %v941_v2, %v214_v39  ;;  %vm1626_vm6 = vcmp.lt.s32.totalorder %v994_v40, 1024  ;;  %vm1608_vm7 = vcmp.lt.s32.totalorder %v997_v41, 1024  ;;  %vm1610_vm8 = vcmp.lt.s32.totalorder %v1000_v42, 1024  ;;  %v1081_v2 = vld [vmem:[%s932_s23] sm:$0xff] }
  0x4a   : > { %1677 = vst [vmem:[#allocation32_spill] sm:$0xff] %v1036_v54  ;;  %1678 = vst [vmem:[#allocation33_spill] sm:$0xff] %v1039_v55  ;;  %vm1614_vm9 = vcmp.lt.s32.totalorder %v1003_v43, 1024  ;;  %vm1616_vm10 = vcmp.lt.s32.totalorder %v1006_v44, 1024  ;;  %vm276_vm14 = vcmp.lt.s32.totalorder %v1057_v61, 1024  ;;  %vm277_vm15 = vcmp.lt.s32.totalorder %v1060_v62, 1024 }
  0x4b   : > { %1679 = vst [vmem:[#allocation34_spill] sm:$0xff] %v1042_v56  ;;  %1680 = vst [vmem:[#allocation35_spill] sm:$0xff] %v1045_v57  ;;  %vm278_vm12 = vcmp.lt.s32.totalorder %v1063_v63, 1024  ;;  %vm279_vm11 = vcmp.lt.s32.totalorder %v1066_v0, 1024  ;;  %vm280_vm13 = vcmp.lt.s32.totalorder %v1069_v3, 1024  ;;  %v1169_v27 = vsel %vm249_vm0, %v1081_v2, 0.0 }
  0x4c   : > { %1681 = vst [vmem:[#allocation36_spill] sm:$0xff] %v1048_v58  ;;  %1682 = vst [vmem:[#allocation37_spill] sm:$0xff] %v1051_v59  ;;  %v1178_v31 = vld [vmem:[%s932_s23 + $0xb8] sm:$0xff]  ;;  %v1183_v32 = vsel %vm250_vm1, %v1088_v4, 0.0  ;;  %v1188_v33 = vsel %vm251_vm2, %v1091_v5, 0.0  ;;  %v1193_v35 = vsel %vm252_vm3, %v1094_v6, 0.0 }
  0x4d   : > { %1683 = vst [vmem:[#allocation38_spill] sm:$0xff] %v1054_v60  ;;  %1684 = vst [vmem:[#allocation39_spill] sm:$0xff] %v1057_v61  ;;  %v1198_v36 = vsel %vm253_vm4, %v1097_v7, 0.0  ;;  %v1201_v37 = vld [vmem:[%s932_s23 + $0xc0] sm:$0xff]  ;;  %v1204_v39 = vld [vmem:[%s932_s23 + $0xc8] sm:$0xff]  ;;  %v1209_v26 = vsel %vm254_vm5, %v1104_v8, 0.0 }
  0x4e   : > { %1685 = vst [vmem:[#allocation40_spill] sm:$0xff] %v1060_v62  ;;  %1686 = vst [vmem:[#allocation41_spill] sm:$0xff] %v1063_v63  ;;  %v1214_v30 = vsel %vm1626_vm6, %v1107_v9, 0.0  ;;  %v1219_v34 = vsel %vm1608_vm7, %v1110_v10, 0.0  ;;  %v1224_v22 = vsel %vm1610_vm8, %v1113_v11, 0.0  ;;  %v1227_v38 = vld [vmem:[%s932_s23 + $0xd0] sm:$0xff] }
  0x4f   : > { %1687 = vst [vmem:[#allocation42_spill] sm:$0xff] %v1066_v0  ;;  %1688 = vst [vmem:[#allocation43_spill] sm:$0xff] %v1069_v3  ;;  %v1230_v18 = vld [vmem:[%s932_s23 + $0xd8] sm:$0xff]  ;;  %v1235_v40 = vsel %vm1614_vm9, %v1120_v12, 0.0  ;;  %v1240_v41 = vsel %vm1616_vm10, %v1123_v13, 0.0  ;;  %vm1701_vm7 = vcmp.lt.s32.totalorder %v1009_v45, 1024 }
  0x50   : > { %1689 = vst [vmem:[#allocation44_spill] sm:$0xff] %v1110_v10  ;;  %1690 = vst [vmem:[#allocation45_spill] sm:$0xff] %v1113_v11  ;;  %v1245_v42 = vsel %vm1701_vm7, %v1126_v14, 0.0  ;;  %vm1702_vm8 = vcmp.lt.s32.totalorder %v1012_v46, 1024  ;;  %v1253_v10 = vld [vmem:[%s932_s23 + $0xe0] sm:$0xff]  ;;  %v1256_v43 = vld [vmem:[%s932_s23 + $0xe8] sm:$0xff] }
  0x51   : > { %1691 = vst [vmem:[#allocation46_spill] sm:$0xff] %v1126_v14  ;;  %1692 = vst [vmem:[#allocation47_spill] sm:$0xff] %v1129_v15  ;;  %v1250_v11 = vsel %vm1702_vm8, %v1129_v15, 0.0  ;;  %vm1705_vm9 = vcmp.lt.s32.totalorder %v1015_v47, 1024  ;;  %vm1706_vm10 = vcmp.lt.s32.totalorder %v1018_v48, 1024  ;;  %vm1707_vm7 = vcmp.lt.s32.totalorder %v1021_v49, 1024 }
  0x52   : > { %1693 = vst [vmem:[#allocation48_spill] sm:$0xff] %v1145_v20  ;;  %1694 = vst [vmem:[#allocation49_spill] sm:$0xff] %v1172_v28  ;;  %v1261_v44 = vsel %vm1705_vm9, %v1136_v16, 0.0  ;;  %v1266_v45 = vsel %vm1706_vm10, %v1139_v17, 0.0  ;;  %v1271_v46 = vsel %vm1707_vm7, %v1142_v19, 0.0  ;;  %vm1708_vm8 = vcmp.lt.s32.totalorder %v1024_v50, 1024 }
  0x53   : > { %1695 = vst [vmem:[#allocation50_spill] sm:$0xff] %v1175_v29  ;;  %1696 = vst [vmem:[#allocation51_spill] sm:$0xff] %v1178_v31  ;;  %v1276_v15 = vsel %vm1708_vm8, %v1145_v20, 0.0  ;;  %v1279_v14 = vld [vmem:[%s932_s23 + $0xf0] sm:$0xff]  ;;  %v1282_v47 = vld [vmem:[%s932_s23 + $0xf8] sm:$0xff]  ;;  %vm1711_vm9 = vcmp.lt.s32.totalorder %v1027_v51, 1024 }
  0x54   : > { %1697 = vst [vmem:[#allocation52_spill] sm:$0xff] %v1201_v37  ;;  %1698 = vst [vmem:[#allocation53_spill] sm:$0xff] %v1204_v39  ;;  %v1287_v48 = vsel %vm1711_vm9, %v1152_v21, 0.0  ;;  %vm1712_vm10 = vcmp.lt.s32.totalorder %v1030_v52, 1024  ;;  %vm1713_vm7 = vcmp.lt.s32.totalorder %v1033_v53, 1024  ;;  %vm1714_vm8 = vcmp.lt.s32.totalorder %v1036_v54, 1024 }
  0x55   : > { %1699 = vst [vmem:[#allocation54_spill] sm:$0xff] %v1227_v38  ;;  %1700 = vst [vmem:[#allocation55_spill] sm:$0xff] %v1230_v18  ;;  %v1292_v49 = vsel %vm1712_vm10, %v1155_v23, 0.0  ;;  %v1297_v50 = vsel %vm1713_vm7, %v1158_v24, 0.0  ;;  %v1302_v20 = vsel %vm1714_vm8, %v1161_v25, 0.0  ;;  %vm1715_vm6 = vcmp.lt.s32.totalorder %v1039_v55, 1024 }
  0x56   : > { %1703 = vst [vmem:[#allocation56_spill] sm:$0xff] %v1253_v10  ;;  %1704 = vst [vmem:[#allocation57_spill] sm:$0xff] %v1256_v43  ;;  %v1307_v51 = vsel %vm1715_vm6, %v1172_v28, 0.0  ;;  %vm1716_vm9 = vcmp.lt.s32.totalorder %v1042_v56, 1024  ;;  %vm1717_vm10 = vcmp.lt.s32.totalorder %v1045_v57, 1024  ;;  %vm1718_vm7 = vcmp.lt.s32.totalorder %v1048_v58, 1024 }
  0x57   : > { %1709 = vst [vmem:[#allocation58_spill] sm:$0xff] %v1279_v14  ;;  %1710 = vst [vmem:[#allocation59_spill] sm:$0xff] %v1282_v47  ;;  %v1312_v52 = vsel %vm1716_vm9, %v1175_v29, 0.0  ;;  %v1317_v53 = vsel %vm1717_vm10, %v1178_v31, 0.0  ;;  %v1322_v54 = vsel %vm1718_vm7, %v1201_v37, 0.0  ;;  %vm1719_vm8 = vcmp.lt.s32.totalorder %v1051_v59, 1024 }
  0x58   : > { %v1327_v55 = vsel %vm1719_vm8, %v1204_v39, 0.0  ;;  %vm1720_vm6 = vcmp.lt.s32.totalorder %v1054_v60, 1024  ;;  %v1337_v57 = vsel %vm276_vm14, %v1230_v18, 0.0  ;;  %v1342_v58 = vsel %vm277_vm15, %v1253_v10, 0.0  ;;  %316 = sbr.rel (%p645_p8) target bundleno = 170 (0xaa), region = 32 }
  0x59   : > { %v1332_v56 = vsel %vm1720_vm6, %v1227_v38, 0.0  ;;  %v1347_v59 = vsel %vm278_vm12, %v1256_v43, 0.0  ;;  %v1352_v60 = vsel %vm279_vm11, %v1279_v14, 0.0  ;;  %v1357_v61 = vsel %vm280_vm13, %v1282_v47, 0.0 }
  0x5d   : > { %v317_v62 = vadd.f32 %v1183_v32, %v1169_v27  ;;  %v835_v10 = vmov 0.0  }
  0x5e   : > { %356 = vst [vmem:[#allocation6] sm:$0x1] %v835_v10  ;;  %357 = vst [vmem:[#allocation7] sm:$0x1] %v835_v10 }
  0x5f   : > { %v318_v63 = vadd.f32 %v317_v62, %v1188_v33 }
  0x61   : > { %v319_v0 = vadd.f32 %v318_v63, %v1193_v35 }
  0x63   : > { %v320_v14 = vadd.f32 %v319_v0, %v1198_v36 }
  0x65   : > { %v321_v43 = vadd.f32 %v320_v14, %v1209_v26 }
  0x67   : > { %v322_v3 = vadd.f32 %v321_v43, %v1214_v30 }
  0x69   : > { %v323_v47 = vadd.f32 %v322_v3, %v1219_v34 }
  0x6b   : > { %v324_v18 = vadd.f32 %v323_v47, %v1224_v22 }
  0x6d   : > { %v325_v38 = vadd.f32 %v324_v18, %v1235_v40 }
  0x6f   : > { %v326_v39 = vadd.f32 %v325_v38, %v1240_v41 }
  0x71   : > { %v327_v10 = vadd.f32 %v326_v39, %v1245_v42 }
  0x73   : > { %v328_v62 = vadd.f32 %v327_v10, %v1250_v11 }
  0x75   : > { %v329_v63 = vadd.f32 %v328_v62, %v1261_v44 }
  0x77   : > { %v330_v0 = vadd.f32 %v329_v63, %v1266_v45 }
  0x79   : > { %v331_v14 = vadd.f32 %v330_v0, %v1271_v46 }
  0x7b   : > { %v332_v43 = vadd.f32 %v331_v14, %v1276_v15 }
  0x7d   : > { %v333_v3 = vadd.f32 %v332_v43, %v1287_v48 }
  0x7f   : > { %v334_v47 = vadd.f32 %v333_v3, %v1292_v49 }
  0x81   : > { %v335_v18 = vadd.f32 %v334_v47, %v1297_v50 }
  0x83   : > { %v336_v38 = vadd.f32 %v335_v18, %v1302_v20 }
  0x85   : > { %v337_v39 = vadd.f32 %v336_v38, %v1307_v51 }
  0x87   : > { %v338_v10 = vadd.f32 %v337_v39, %v1312_v52 }
  0x89   : > { %v339_v62 = vadd.f32 %v338_v10, %v1317_v53 }
  0x8b   : > { %v340_v63 = vadd.f32 %v339_v62, %v1322_v54 }
  0x8d   : > { %v341_v0 = vadd.f32 %v340_v63, %v1327_v55 }
  0x8f   : > { %v342_v14 = vadd.f32 %v341_v0, %v1332_v56 }
  0x91   : > { %v343_v43 = vadd.f32 %v342_v14, %v1337_v57 }
  0x93   : > { %v344_v3 = vadd.f32 %v343_v43, %v1342_v58 }
  0x95   : > { %v345_v47 = vadd.f32 %v344_v3, %v1347_v59 }
  0x97   : > { %v346_v18 = vadd.f32 %v345_v47, %v1352_v60 }
  0x99   : > { %v347_v38 = vadd.f32 %v346_v18, %v1357_v61 }
  0x9b   : > { %v348_v37 = vrot.slane %v347_v38, 4 }
  0x9d   : > { %v349_v39 = vadd.f32 %v348_v37, %v347_v38 }
  0x9f   : > { %v350_v31 = vrot.slane %v349_v39, 2 }
  0xa1   : > { %v351_v10 = vadd.f32 %v350_v31, %v349_v39 }
  0xa3   : > { %v352_v29 = vrot.slane %v351_v10, 1 }
  0xa5   : > { %v353_v62 = vadd.f32 %v352_v29, %v351_v10 }
  0xa7   : > { %v354_v28 = vmul.f32 0.00390625, %v353_v62 }
  0xa9   : > { %355 = vst [vmem:[#allocation2] sm:$0x1] %v354_v28 }
  0xaa PF: > { %v360_v63 = vadd.f32 %v1183_v32, %v1169_v27  ;;  %v403_v29 = vsub.s32 0, %v939_v1  ;;  %p646_p9 = scmp.ne.s32.totalorder %s872_s13, 3 }
  0xac   : > { %v361_v0 = vadd.f32 %v360_v63, %v1188_v33 }
  0xae   : > { %v362_v14 = vadd.f32 %v361_v0, %v1193_v35 }
  0xb0   : > { %v363_v43 = vadd.f32 %v362_v14, %v1198_v36  ;;  %v1401_v47 = vld [vmem:[#allocation2] sm:$0x1] }
  0xb1   : > { %v1406_v32 = vrot.slane %v1401_v47, %v403_v29  ;;  %v1726_v29 = vld [vmem:[#allocation45_spill] sm:$0xff] }
  0xb2   : > { %v364_v3 = vadd.f32 %v363_v43, %v1209_v26 }
  0xb3   : > { %v406_v26 = vsub.f32 %v1081_v2, %v1406_v32  ;;  %v410_v2 = vsub.f32 %v1097_v7, %v1406_v32 }
  0xb4   : > { %v365_v37 = vadd.f32 %v364_v3, %v1214_v30  ;;  %v407_v30 = vsub.f32 %v1088_v4, %v1406_v32 }
  0xb5   : > { %v438_v36 = vmul.f32 %v406_v26, %v406_v26  ;;  %v442_v62 = vmul.f32 %v410_v2, %v410_v2  ;;  %v415_v26 = vsub.f32 %v1120_v12, %v1406_v32 }
  0xb6   : > { %v366_v31 = vadd.f32 %v365_v37, %v1219_v34 }
  0xb8   : > { %v367_v28 = vadd.f32 %v366_v31, %v1224_v22  ;;  %v408_v22 = vsub.f32 %v1091_v5, %v1406_v32 }
  0xba   : > { %v368_v27 = vadd.f32 %v367_v28, %v1235_v40  ;;  %v409_v40 = vsub.f32 %v1094_v6, %v1406_v32  ;;  %v440_v18 = vmul.f32 %v408_v22, %v408_v22 }
  0xbc   : > { %v369_v33 = vadd.f32 %v368_v27, %v1240_v41  ;;  %v439_v41 = vmul.f32 %v407_v30, %v407_v30  ;;  %v441_v38 = vmul.f32 %v409_v40, %v409_v40  ;;  %v472_v63 = vsel %vm251_vm2, %v440_v18, 0.0  ;;  %v1731_v18 = vld [vmem:[#allocation46_spill] sm:$0xff] }
  0xbd   : > { %v416_v40 = vsub.f32 %v1123_v13, %v1406_v32  ;;  %v417_v12 = vsub.f32 %v1731_v18, %v1406_v32 }
  0xbe   : > { %v370_v35 = vadd.f32 %v369_v33, %v1245_v42  ;;  %v471_v6 = vsel %vm250_vm1, %v439_v41, 0.0  ;;  %v473_v37 = vsel %vm252_vm3, %v441_v38, 0.0  ;;  %v474_v33 = vsel %vm253_vm4, %v442_v62, 0.0  ;;  %v1729_v41 = vld [vmem:[#allocation18_spill] sm:$0xff] }
  0xbf   : > { %v448_v39 = vmul.f32 %v416_v40, %v416_v40  ;;  %v419_v62 = vsub.f32 %v1136_v16, %v1406_v32  ;;  %v449_v7 = vmul.f32 %v417_v12, %v417_v12  ;;  %v421_v16 = vsub.f32 %v1142_v19, %v1406_v32  ;;  %v1748_v40 = vld [vmem:[#allocation26_spill] sm:$0xff] }
  0xc0   : > { %v371_v1 = vadd.f32 %v370_v35, %v1250_v11  ;;  %v411_v11 = vsub.f32 %v1104_v8, %v1406_v32  ;;  %v1724_v8 = vld [vmem:[#allocation44_spill] sm:$0xff]  ;;  %v423_v19 = vsub.f32 %v1152_v21, %v1406_v32  ;;  %vm1749_vm7 = vcmp.lt.s32.totalorder %v1748_v40, 1024  ;;  %v1773_v40 = vld [vmem:[#allocation35_spill] sm:$0xff] }
  0xc1   : > { %v413_v14 = vsub.f32 %v1724_v8, %v1406_v32  ;;  %v420_v8 = vsub.f32 %v1139_v17, %v1406_v32  ;;  %v425_v21 = vsub.f32 %v1158_v24, %v1406_v32 }
  0xc2   : > { %v372_v34 = vadd.f32 %v371_v1, %v1261_v44  ;;  %v470_v44 = vsel %vm249_vm0, %v438_v36, 0.0  ;;  %v443_v43 = vmul.f32 %v411_v11, %v411_v11  ;;  %vm1730_vm0 = vcmp.lt.s32.totalorder %v1729_v41, 1024  ;;  %v1732_v11 = vld [vmem:[#allocation19_spill] sm:$0xff] }
  0xc3   : > { %v502_v0 = vadd.f32 %v471_v6, %v470_v44  ;;  %v445_v30 = vmul.f32 %v413_v14, %v413_v14  ;;  %vm1733_vm1 = vcmp.lt.s32.totalorder %v1732_v11, 1024  ;;  %v1734_v44 = vld [vmem:[#allocation47_spill] sm:$0xff]  ;;  %v1735_v6 = vld [vmem:[#allocation20_spill] sm:$0xff]  ;;  %v452_v27 = vmul.f32 %v420_v8, %v420_v8 }
  0xc4   : > { %v373_v42 = vadd.f32 %v372_v34, %v1266_v45  ;;  %v412_v45 = vsub.f32 %v1107_v9, %v1406_v32  ;;  %v414_v9 = vsub.f32 %v1726_v29, %v1406_v32  ;;  %v475_v22 = vsel %vm254_vm5, %v443_v43, 0.0  ;;  %v1739_v43 = vld [vmem:[#allocation22_spill] sm:$0xff] }
  0xc5   : > { %v477_v38 = vsel %vm1733_vm1, %v445_v30, 0.0  ;;  %v418_v13 = vsub.f32 %v1734_v44, %v1406_v32  ;;  %vm1736_vm2 = vcmp.lt.s32.totalorder %v1735_v6, 1024  ;;  %vm1740_vm4 = vcmp.lt.s32.totalorder %v1739_v43, 1024  ;;  %v1746_v30 = vld [vmem:[#allocation25_spill] sm:$0xff]  ;;  %v1757_v6 = vld [vmem:[#allocation50_spill] sm:$0xff]  ;;  %v1763_v43 = vld [vmem:[#allocation52_spill] sm:$0xff] }
  0xc6   : > { %v374_v4 = vadd.f32 %v373_v42, %v1271_v46  ;;  %v444_v28 = vmul.f32 %v412_v45, %v412_v45  ;;  %v446_v36 = vmul.f32 %v414_v9, %v414_v9  ;;  %v480_v3 = vsel %vm1740_vm4, %v448_v39, 0.0  ;;  %v1755_v44 = vld [vmem:[#allocation29_spill] sm:$0xff] }
  0xc7   : > { %v450_v14 = vmul.f32 %v418_v13, %v418_v13  ;;  %vm1747_vm10 = vcmp.lt.s32.totalorder %v1746_v30, 1024 }
  0xc8   : > { %v375_v10 = vadd.f32 %v374_v4, %v1276_v15  ;;  %v503_v15 = vadd.f32 %v502_v0, %v472_v63  ;;  %v476_v42 = vsel %vm1730_vm0, %v444_v28, 0.0  ;;  %v447_v4 = vmul.f32 %v415_v26, %v415_v26  ;;  %v1737_v63 = vld [vmem:[#allocation21_spill] sm:$0xff]  ;;  %v1743_v28 = vld [vmem:[#allocation48_spill] sm:$0xff] }
  0xc9   : > { %vm1738_vm3 = vcmp.lt.s32.totalorder %v1737_v63, 1024  ;;  %v422_v17 = vsub.f32 %v1743_v28, %v1406_v32  ;;  %v453_v26 = vmul.f32 %v421_v16, %v421_v16  ;;  %vm1756_vm0 = vcmp.lt.s32.totalorder %v1755_v44, 1024  ;;  %v1767_v28 = vld [vmem:[#allocation33_spill] sm:$0xff]  ;;  %v1782_v44 = vld [vmem:[#allocation38_spill] sm:$0xff] }
  0xca   : > { %v376_v46 = vadd.f32 %v375_v10, %v1287_v48  ;;  %v504_v35 = vadd.f32 %v503_v15, %v473_v37  ;;  %v478_v10 = vsel %vm1736_vm2, %v446_v36, 0.0  ;;  %v1741_v15 = vld [vmem:[#allocation23_spill] sm:$0xff]  ;;  %v484_v36 = vsel %vm1749_vm7, %v452_v27, 0.0 }
  0xcb   : > { %vm1742_vm5 = vcmp.lt.s32.totalorder %v1741_v15, 1024  ;;  %vm1768_vm4 = vcmp.lt.s32.totalorder %v1767_v28, 1024  ;;  %v399_v28 = vld [vmem:[#allocation7] sm:$0x1] }
  0xcc   : > { %v377_v31 = vadd.f32 %v376_v46, %v1292_v49  ;;  %v505_v34 = vadd.f32 %v504_v35, %v474_v33  ;;  %v479_v46 = vsel %vm1738_vm3, %v447_v4, 0.0  ;;  %v481_v29 = vsel %vm1742_vm5, %v449_v7, 0.0  ;;  %v1744_v33 = vld [vmem:[#allocation24_spill] sm:$0xff] }
  0xcd   : > { %vm1745_vm9 = vcmp.lt.s32.totalorder %v1744_v33, 1024  ;;  %v1752_v4 = vld [vmem:[#allocation28_spill] sm:$0xff] }
  0xce   : > { %v378_v48 = vadd.f32 %v377_v31, %v1297_v50  ;;  %v506_v2 = vadd.f32 %v505_v34, %v475_v22  ;;  %v451_v31 = vmul.f32 %v419_v62, %v419_v62  ;;  %v454_v34 = vmul.f32 %v422_v17, %v422_v17 }
  0xcf   : > { %vm1753_vm6 = vcmp.lt.s32.totalorder %v1752_v4, 1024 }
  0xd0   : > { %v379_v49 = vadd.f32 %v378_v48, %v1302_v20  ;;  %v507_v5 = vadd.f32 %v506_v2, %v476_v42  ;;  %v482_v48 = vsel %vm1745_vm9, %v450_v14, 0.0  ;;  %v483_v1 = vsel %vm1747_vm10, %v451_v31, 0.0 }
  0xd1   : > { %v455_v42 = vmul.f32 %v423_v19, %v423_v19  ;;  %v486_v11 = vsel %vm1753_vm6, %v454_v34, 0.0  ;;  %vm1774_vm9 = vcmp.lt.s32.totalorder %v1773_v40, 1024 }
  0xd2   : > { %v380_v50 = vadd.f32 %v379_v49, %v1307_v51  ;;  %v508_v45 = vadd.f32 %v507_v5, %v477_v38  ;;  %v424_v49 = vsub.f32 %v1155_v23, %v1406_v32  ;;  %v426_v23 = vsub.f32 %v1161_v25, %v1406_v32 }
  0xd3   : > { %v457_v5 = vmul.f32 %v425_v21, %v425_v21  ;;  %v487_v13 = vsel %vm1756_vm0, %v455_v42, 0.0  ;;  %v1775_v21 = vld [vmem:[#allocation56_spill] sm:$0xff] }
  0xd4   : > { %v381_v20 = vadd.f32 %v380_v50, %v1312_v52  ;;  %v509_v0 = vadd.f32 %v508_v45, %v478_v10  ;;  %v1750_v50 = vld [vmem:[#allocation27_spill] sm:$0xff]  ;;  %v456_v12 = vmul.f32 %v424_v49, %v424_v49  ;;  %v428_v10 = vsub.f32 %v1757_v6, %v1406_v32 }
  0xd5   : > { %vm1751_vm8 = vcmp.lt.s32.totalorder %v1750_v50, 1024  ;;  %v458_v25 = vmul.f32 %v426_v23, %v426_v23  ;;  %v434_v42 = vsub.f32 %v1775_v21, %v1406_v32  ;;  %v1778_v23 = vld [vmem:[#allocation57_spill] sm:$0xff] }
  0xd6   : > { %v382_v51 = vadd.f32 %v381_v20, %v1317_v53  ;;  %v510_v37 = vadd.f32 %v509_v0, %v479_v46  ;;  %v485_v2 = vsel %vm1751_vm8, %v453_v26, 0.0  ;;  %v1754_v20 = vld [vmem:[#allocation49_spill] sm:$0xff]  ;;  %v1770_v26 = vld [vmem:[#allocation34_spill] sm:$0xff]  ;;  %vm1783_vm8 = vcmp.lt.s32.totalorder %v1782_v44, 1024 }
  0xd7   : > { %v427_v24 = vsub.f32 %v1754_v20, %v1406_v32  ;;  %vm1771_vm5 = vcmp.lt.s32.totalorder %v1770_v26, 1024  ;;  %v1781_v20 = vld [vmem:[#allocation58_spill] sm:$0xff] }
  0xd8   : > { %v383_v52 = vadd.f32 %v382_v51, %v1322_v54  ;;  %v511_v9 = vadd.f32 %v510_v37, %v480_v3  ;;  %v1758_v51 = vld [vmem:[#allocation30_spill] sm:$0xff]  ;;  %v430_v3 = vsub.f32 %v1763_v43, %v1406_v32  ;;  %v1764_v37 = vld [vmem:[#allocation32_spill] sm:$0xff] }
  0xd9   : > { %vm1759_vm1 = vcmp.lt.s32.totalorder %v1758_v51, 1024  ;;  %v459_v46 = vmul.f32 %v427_v24, %v427_v24  ;;  %vm1765_vm3 = vcmp.lt.s32.totalorder %v1764_v37, 1024  ;;  %v436_v24 = vsub.f32 %v1781_v20, %v1406_v32 }
  0xda   : > { %v384_v53 = vadd.f32 %v383_v52, %v1327_v55  ;;  %v512_v35 = vadd.f32 %v511_v9, %v481_v29  ;;  %v488_v45 = vsel %vm1759_vm1, %v456_v12, 0.0  ;;  %v1761_v52 = vld [vmem:[#allocation31_spill] sm:$0xff]  ;;  %v490_v16 = vsel %vm1765_vm3, %v458_v25, 0.0  ;;  %v1766_v29 = vld [vmem:[#allocation53_spill] sm:$0xff] }
  0xdb   : > { %vm1762_vm2 = vcmp.lt.s32.totalorder %v1761_v52, 1024  ;;  %v491_v17 = vsel %vm1768_vm4, %v459_v46, 0.0  ;;  %v462_v19 = vmul.f32 %v430_v3, %v430_v3  ;;  %v435_v12 = vsub.f32 %v1778_v23, %v1406_v32 }
  0xdc   : > { %v385_v54 = vadd.f32 %v384_v53, %v1332_v56  ;;  %v513_v22 = vadd.f32 %v512_v35, %v482_v48  ;;  %v489_v0 = vsel %vm1762_vm2, %v457_v5, 0.0  ;;  %v460_v53 = vmul.f32 %v428_v10, %v428_v10  ;;  %v359_v48 = vld [vmem:[#allocation6] sm:$0x1] }
  0xdd   : > { %v466_v5 = vmul.f32 %v434_v42, %v434_v42  ;;  %v467_v10 = vmul.f32 %v435_v12, %v435_v12 }
  0xde   : > { %v386_v55 = vadd.f32 %v385_v54, %v1337_v57  ;;  %v514_v41 = vadd.f32 %v513_v22, %v483_v1  ;;  %v431_v54 = vsub.f32 %v1766_v29, %v1406_v32  ;;  %v492_v30 = vsel %vm1771_vm5, %v460_v53, 0.0  ;;  %v1772_v22 = vld [vmem:[#allocation55_spill] sm:$0xff] }
  0xdf   : > { %v433_v49 = vsub.f32 %v1772_v22, %v1406_v32 }
  0xe0   : > { %v387_v56 = vadd.f32 %v386_v55, %v1342_v58  ;;  %v515_v18 = vadd.f32 %v514_v41, %v484_v36  ;;  %v1769_v55 = vld [vmem:[#allocation54_spill] sm:$0xff]  ;;  %v463_v34 = vmul.f32 %v431_v54, %v431_v54 }
  0xe1   : > { %v432_v35 = vsub.f32 %v1769_v55, %v1406_v32  ;;  %v465_v4 = vmul.f32 %v433_v49, %v433_v49 }
  0xe2   : > { %v388_v57 = vadd.f32 %v387_v56, %v1347_v59  ;;  %v516_v38 = vadd.f32 %v515_v18, %v485_v2  ;;  %v1776_v2 = vld [vmem:[#allocation36_spill] sm:$0xff] }
  0xe3   : > { %v464_v50 = vmul.f32 %v432_v35, %v432_v35  ;;  %vm1777_vm10 = vcmp.lt.s32.totalorder %v1776_v2, 1024  ;;  %v497_v51 = vsel %vm276_vm14, %v465_v4, 0.0 }
  0xe4   : > { %v389_v58 = vadd.f32 %v388_v57, %v1352_v60  ;;  %v517_v60 = vadd.f32 %v516_v38, %v486_v11  ;;  %v1779_v11 = vld [vmem:[#allocation37_spill] sm:$0xff] }
  0xe5   : > { %vm1780_vm7 = vcmp.lt.s32.totalorder %v1779_v11, 1024 }
  0xe6   : > { %v390_v59 = vadd.f32 %v389_v58, %v1357_v61  ;;  %v518_v7 = vadd.f32 %v517_v60, %v487_v13  ;;  %v1760_v61 = vld [vmem:[#allocation51_spill] sm:$0xff]  ;;  %v494_v58 = vsel %vm1777_vm10, %v462_v19, 0.0  ;;  %v496_v13 = vsel %vm1783_vm8, %v464_v50, 0.0 }
  0xe7   : > { %v429_v63 = vsub.f32 %v1760_v61, %v1406_v32  ;;  %v1784_v60 = vld [vmem:[#allocation59_spill] sm:$0xff]  ;;  %v498_v61 = vsel %vm277_vm15, %v466_v5, 0.0 }
  0xe8   : > { %v391_v39 = vrot.slane %v390_v59, 4  ;;  %v519_v14 = vadd.f32 %v518_v7, %v488_v45  ;;  %v437_v6 = vsub.f32 %v1784_v60, %v1406_v32 }
  0xe9   : > { %v461_v9 = vmul.f32 %v429_v63, %v429_v63 }
  0xea   : > { %v392_v62 = vadd.f32 %v391_v39, %v390_v59  ;;  %v520_v15 = vadd.f32 %v519_v14, %v489_v0  ;;  %v495_v59 = vsel %vm1780_vm7, %v463_v34, 0.0  ;;  %v469_v46 = vmul.f32 %v437_v6, %v437_v6 }
  0xeb   : > { %v493_v36 = vsel %vm1774_vm9, %v461_v9, 0.0  ;;  %v499_v0 = vsel %vm278_vm12, %v467_v10, 0.0 }
  0xec   : > { %v393_v8 = vrot.slane %v392_v62, 2  ;;  %v521_v33 = vadd.f32 %v520_v15, %v490_v16  ;;  %v501_v53 = vsel %vm280_vm13, %v469_v46, 0.0 }
  0xee   : > { %v394_v31 = vadd.f32 %v393_v8, %v392_v62  ;;  %v522_v56 = vadd.f32 %v521_v33, %v491_v17  ;;  %v468_v62 = vmul.f32 %v436_v24, %v436_v24 }
  0xf0   : > { %v395_v27 = vrot.slane %v394_v31, 1  ;;  %v523_v41 = vadd.f32 %v522_v56, %v492_v30  ;;  %v500_v43 = vsel %vm279_vm11, %v468_v62, 0.0 }
  0xf2   : > { %v396_v1 = vadd.f32 %v395_v27, %v394_v31  ;;  %v524_v18 = vadd.f32 %v523_v41, %v493_v36 }
  0xf4   : > { %v397_v57 = vadd.f32 %v396_v1, %v359_v48  ;;  %v525_v38 = vadd.f32 %v524_v18, %v494_v58 }
  0xf6   : > { %398 = vst [vmem:[#allocation6] sm:$0x1] %v397_v57  ;;  %v526_v39 = vadd.f32 %v525_v38, %v495_v59 }
  0xf8   : > { %v527_v45 = vadd.f32 %v526_v39, %v496_v13 }
  0xfa   : > { %v528_v63 = vadd.f32 %v527_v45, %v497_v51 }
  0xfc   : > { %v529_v8 = vadd.f32 %v528_v63, %v498_v61 }
  0xfe   : > { %v530_v3 = vadd.f32 %v529_v8, %v499_v0 }
 0x100   : > { %v531_v37 = vadd.f32 %v530_v3, %v500_v43 }
 0x102   : > { %v532_v16 = vadd.f32 %v531_v37, %v501_v53 }
 0x104   : > { %v533_v31 = vrot.slane %v532_v16, 4 }
 0x106   : > { %v534_v15 = vadd.f32 %v533_v31, %v532_v16 }
 0x108   : > { %v535_v29 = vrot.slane %v534_v15, 2 }
 0x10a   : > { %v536_v54 = vadd.f32 %v535_v29, %v534_v15 }
 0x10c   : > { %v537_v9 = vrot.slane %v536_v54, 1 }
 0x10e   : > { %v538_v17 = vadd.f32 %v537_v9, %v536_v54  ;;  %544 = sbr.rel (%p646_p9) target bundleno = 305 (0x131), region = 36 }
 0x110   : > { %v539_v27 = vadd.f32 %v538_v17, %v399_v28 }
 0x112   : > { %540 = vst [vmem:[#allocation7] sm:$0x1] %v539_v27 }
 0x113   : > { %v545_v33 = vld [vmem:[#allocation6] sm:$0x1] }
 0x114   : > { %v546_v55 = vmul.f32 0.0009765625, %v545_v33 }
 0x116   : > { %v549_v35 = vsub.f32 %v546_v55, %v1401_v47  ;;  %553 = vst [vmem:[#allocation6] sm:$0x1] %v546_v55 }
 0x118   : > { %v550_v26 = vmul.f32 %v549_v35, %v549_v35 }
 0x119   : > { %v547_v48 = vld [vmem:[#allocation7] sm:$0x1] }
 0x11a   : > { %v548_v19 = vmul.f32 0.0009765625, %v547_v48 }
 0x11c   : > { %v551_v30 = vsub.f32 %v548_v19, %v550_v26 }
 0x11e   : > { %v552_v1 = vmax.f32 %v551_v30, 0.0 }
 0x120   : > { %v554_v56 = vadd.f32 1e-05, %v552_v1 }
 0x122   : > { %710 = vrsqrt.f32 %v554_v56 }
 0x12f   : > { %v711_v22 = vpop.eup %710 }
 0x130   : > { %556 = vst [vmem:[#allocation7] sm:$0x1] %v711_v22 }
 0x131 PF: > { %p669_p1 = scmp.eq.s32.totalorder %s872_s13, 3  ;;  %s836_s12 = smov [#allocation6]  }
 0x132   : > { %s564_s18 = sshll.u32 %s836_s12, 4  ;;  %s837_s24 = smov [#allocation7]   ;;  %s565_s18 = int_to_ptr.vmem [resolvable:$true] %s564_s18 }
 0x133   : > { %s575_s26 = sshll.u32 %s837_s24, 4  ;;  %s740_s27 = scalar_lea.vmem %s565_s18, 16  ;;  %s576_s26 = int_to_ptr.vmem [resolvable:$true] %s575_s26 }
 0x134   : > { %p741_p2 = scmp.ne.s32.totalorder %s565_s18, %s740_s27  ;;  %s746_s28 = scalar_lea.vmem %s565_s18, 32 }
 0x135   : > { %p747_p5 = scmp.lt.s32.totalorder %s565_s18, %s565_s18  ;;  %p748_p6 = scmp.lt.s32.totalorder %s746_s28, %s740_s27 }
 0x136   : > { %p742_p3 = pnand %p741_p2, %p669_p1 }
 0x137   : > { %p749_p10 = por %p748_p6, %p747_p5 }
 0x138   : > { %p743_p4 = pneg %p742_p3 }
 0x13a   : > { %p750_p12 = pnand %p749_p10, %p743_p4 }
 0x13c   : > { %753 = shalt.err (!%p750_p12)
}
 0x13d   : > { %657 = dma.vmem_to_hbm [thread:$0]  (%p669_p1), %s565_s18, 16, %s1597_s1, [#allocation5]  }
 0x13e   : > { %s764_s3 = scalar_lea.vmem %s576_s26, 16  ;;  %s770_s4 = scalar_lea.vmem %s576_s26, 32 }
 0x13f   : > { %p765_p11 = scmp.ne.s32.totalorder %s576_s26, %s764_s3  ;;  %p771_p7 = scmp.lt.s32.totalorder %s576_s26, %s576_s26 }
 0x140   : > { %p772_p8 = scmp.lt.s32.totalorder %s770_s4, %s764_s3 }
 0x141   : > { %p766_p13 = pnand %p765_p11, %p669_p1 }
 0x142   : > { %p773_p9 = por %p772_p8, %p771_p7 }
 0x143   : > { %p767_p0 = pneg %p766_p13 }
 0x145   : > { %p774_p2 = pnand %p773_p9, %p767_p0 }
 0x147   : > { %777 = shalt.err (!%p774_p2)
}
 0x148   : > { %659 = dma.vmem_to_hbm [thread:$0]  (%p669_p1), %s576_s26, 16, %s1598_s2, [#allocation8]  }
 0x149   : > { %809 = dma.done.wait (%p669_p1), [#allocation5], 16  }
 0x14a   : > { %811 = vsyncadd (%p669_p1), [#allocation5], 4294967280 }
 0x14b   : > { %813 = dma.done.wait (%p669_p1), [#allocation8], 16  }
 0x14c   : > { %815 = vsyncadd (%p669_p1), [#allocation8], 4294967280 }
 0x14d PF: > { %p15_p3 = scmp.ge.s32.totalorder %s875_s14, 6   ;;  %s1790_s9 = smov %s822_s10 }
 0x14e   : > { %s1791_s10 = smov %s826_s11  ;;  %s1792_s11 = smov %s885_s17 }
 0x14f   : > { %s1793_s12 = smov %s875_s14  ;;  %17 = sbr.rel (!%p15_p3) target bundleno = 5 (0x5), region = 77 }
 0x154   :  { %592 = vsyncpa [#allocation4], 1 }
 0x155   :  { %594 = vsyncpa [#allocation4 + $0x1], 1 }
 0x156   :  { %595 = vsyncpa [#allocation5], 1 }
 0x157   :  { %597 = vsyncpa [#allocation5 + $0x1], 1 }
 0x158   :  { %598 = vsyncpa [#allocation8], 1 }

</bundles_post_ra>
